<compile_context>
chip_gen: v7x
topology: tpu7x:2x2x1
jax: 0.10.0
libtpu: 0.0.40
codegen_flags: <defaults>
</compile_context>

<pallas_src>
import functools

import jax
import jax.numpy as jnp
from jax.experimental import pallas as pl
from jax.experimental.pallas import tpu as pltpu


def _round_up(v: int, m: int) -> int:
    return (v + m - 1) // m * m


def _cdiv(a: int, b: int) -> int:
    return -(-a // b)


def _vmem_capacity_bytes() -> int:
    """Best-effort physical VMEM query; falls back to a v7x-safe 64 MiB."""
    try:
        info = pltpu.get_tpu_info()
        for attr in ("vmem_capacity_bytes", "vmem_bytes", "vmem_size_bytes"):
            v = getattr(info, attr, None)
            if isinstance(v, int) and v > 0:
                return v
    except Exception:
        pass
    return 64 * 1024 * 1024


# ----------------------------- kernels --------------------------------------


def _dense_kernel_onepass(x_ref, w_ref, b_ref, o_ref):
    """Whole K in one tile: o = x @ w.T + b for one (tm, tn) output tile."""
    p = jax.lax.dot_general(
        x_ref[...],
        w_ref[...],
        dimension_numbers=(((1,), (1,)), ((), ())),  # contract K of both
        preferred_element_type=jnp.float32,
    )
    o_ref[...] = (p + b_ref[...].astype(jnp.float32)).astype(o_ref.dtype)


def _dense_kernel_acc(x_ref, w_ref, b_ref, o_ref, acc_ref):
    """K tiled over grid axis 2 (only used when num_programs(2) >= 2).

    x_ref:  (tm, tk)   activation tile
    w_ref:  (tn, tk)   weight tile, PyTorch [out, in] layout (no transpose)
    b_ref:  (1,  tn)   bias tile
    o_ref:  (tm, tn)   output tile
    acc_ref:(tm, tn)   f32 VMEM accumulator, persists across K steps
    """
    k = pl.program_id(2)
    nk = pl.num_programs(2)

    p = jax.lax.dot_general(
        x_ref[...],
        w_ref[...],
        dimension_numbers=(((1,), (1,)), ((), ())),
        preferred_element_type=jnp.float32,
    )

    @pl.when(k == 0)
    def _init():
        acc_ref[...] = p

    @pl.when(jnp.logical_and(k > 0, k < nk - 1))
    def _accum():
        acc_ref[...] += p

    @pl.when(k == nk - 1)
    def _finalize():
        # Skip the last accumulator round-trip: fold the final partial product
        # and the (f32) bias straight into the output store.
        o_ref[...] = (acc_ref[...] + p + b_ref[...].astype(jnp.float32)).astype(
            o_ref.dtype
        )


# ----------------------------- wrapper ---------------------------------------


def dense_forward(x, weight, bias, *, compute_dtype=None):
    """Equivalent of `Dense.forward`.

    x:      [batch, input_dim]          float32
    weight: [output_dim, input_dim]     (PyTorch nn.Linear convention)
    bias:   [output_dim]
    returns [batch, output_dim, 1]
    """
    batch, input_dim = x.shape
    output_dim = weight.shape[0]
    out_dtype = x.dtype

    # Optional bf16 cast of the streamed operands; accumulation stays f32.
    if compute_dtype is not None:
        x = x.astype(compute_dtype)
        weight = weight.astype(compute_dtype)
    itemsize = jnp.dtype(x.dtype).itemsize

    # --- generation-aware tile caps / VMEM budget -----------------------------
    vmem_cap = _vmem_capacity_bytes()
    if vmem_cap >= 100 * 1024 * 1024:          # v5e / v6e: 128 MiB physical VMEM
        tm_cap, tn_cap, tk_cap = 512, 1024, 2048
        vmem_limit = 64 * 1024 * 1024
        two_cores = False
    else:                                       # v7x: 64 MiB VMEM, 2 TCs / chip
        tm_cap, tn_cap, tk_cap = 512, 1024, 1024
        vmem_limit = 48 * 1024 * 1024
        two_cores = True

    # --- K tiling: the only axis that must be exactly tiled (zero-padded) ----
    if input_dim <= tk_cap:
        tk, kp = input_dim, input_dim           # whole K in one tile, no pad
    else:
        kp = _round_up(input_dim, 128)
        tk, t = 128, 128
        while t <= tk_cap:                      # largest 128-multiple dividing kp
            if kp % t == 0:
                tk = t
            t += 128
    grid_k = kp // tk

    # --- M / N tiling: partial edge blocks, no padding ------------------------
    tm = min(tm_cap, _round_up(batch, 8))
    if _round_up(output_dim, 128) <= tn_cap:
        tn = output_dim                          # one N tile -> x streamed once
    else:
        tn = tn_cap
    grid_m = _cdiv(batch, tm)
    grid_n = _cdiv(output_dim, tn)

    # v7x: expose >=2 parallel (M x N) tiles so both TensorCores get work.
    if two_cores and grid_m * grid_n == 1:
        if batch >= 16:
            tm = _round_up(_cdiv(batch, 2), 8)
        elif output_dim >= 256:
            tn = _round_up(_cdiv(output_dim, 2), 128)
        grid_m = _cdiv(batch, tm)
        grid_n = _cdiv(output_dim, tn)

    # Zero-pad K only when it cannot be covered/tiled exactly (rare).
    x_in, w_in = x, weight
    if kp != input_dim:
        x_in = jnp.pad(x, ((0, 0), (0, kp - input_dim)))
        w_in = jnp.pad(weight, ((0, 0), (0, kp - input_dim)))
    b_in = bias.reshape(1, output_dim)

    flops = 2 * batch * output_dim * kp
    bytes_accessed = (
        itemsize * batch * kp * grid_n          # x re-read once per N tile
        + itemsize * output_dim * kp * grid_m   # w re-read once per M tile
        + itemsize * batch * output_dim         # output write
        + 4 * output_dim                        # bias
    )
    cost = pl.CostEstimate(
        flops=flops, transcendentals=0, bytes_accessed=bytes_accessed
    )

    if grid_k == 1:
        y = pl.pallas_call(
            _dense_kernel_onepass,
            out_shape=jax.ShapeDtypeStruct((batch, output_dim), out_dtype),
            grid_spec=pltpu.PrefetchScalarGridSpec(
                num_scalar_prefetch=0,
                grid=(grid_m, grid_n),
                in_specs=[
                    pl.BlockSpec((tm, kp), lambda i, j: (i, 0)),   # x
                    pl.BlockSpec((tn, kp), lambda i, j: (j, 0)),   # weight [N, K]
                    pl.BlockSpec((1, tn), lambda i, j: (0, j)),    # bias
                ],
                out_specs=pl.BlockSpec((tm, tn), lambda i, j: (i, j)),
            ),
            compiler_params=pltpu.CompilerParams(
                dimension_semantics=("parallel", "parallel"),
                vmem_limit_bytes=vmem_limit,
            ),
            cost_estimate=cost,
        )(x_in, w_in, b_in)
    else:
        y = pl.pallas_call(
            _dense_kernel_acc,
            out_shape=jax.ShapeDtypeStruct((batch, output_dim), out_dtype),
            grid_spec=pltpu.PrefetchScalarGridSpec(
                num_scalar_prefetch=0,
                grid=(grid_m, grid_n, grid_k),
                in_specs=[
                    pl.BlockSpec((tm, tk), lambda i, j, k: (i, k)),   # x
                    pl.BlockSpec((tn, tk), lambda i, j, k: (j, k)),   # weight
                    pl.BlockSpec((1, tn), lambda i, j, k: (0, j)),    # bias
                ],
                out_specs=pl.BlockSpec((tm, tn), lambda i, j, k: (i, j)),
                scratch_shapes=[pltpu.VMEM((tm, tn), jnp.float32)],
            ),
            compiler_params=pltpu.CompilerParams(
                dimension_semantics=("parallel", "parallel", "arbitrary"),
                vmem_limit_bytes=vmem_limit,
            ),
            cost_estimate=cost,
        )(x_in, w_in, b_in)

    # Append trailing singleton dim to match the module's `[..., None]`.
    return y[..., None]


def _init_linear_params(key, input_dim, output_dim):
    """Deterministic init mimicking nn.Linear uniform(-1/sqrt(fan_in), ...)."""
    kw, kb = jax.random.split(key)
    bound = 1.0 / (input_dim ** 0.5)
    weight = jax.random.uniform(
        kw, (output_dim, input_dim), minval=-bound, maxval=bound, dtype=jnp.float32
    )
    bias = jax.random.uniform(
        kb, (output_dim,), minval=-bound, maxval=bound, dtype=jnp.float32
    )
    return weight, bias


if __name__ == "__main__":
    key = jax.random.PRNGKey(0)
    forward = jax.jit(dense_forward)

    # --- Test 1: small shapes consistent with the module (embedded cond var) ---
    batch, input_dim, output_dim = 8, 32, 16
    k1, k2, key = jax.random.split(key, 3)
    x = jax.random.normal(k1, (batch, input_dim), dtype=jnp.float32)
    weight, bias = _init_linear_params(k2, input_dim, output_dim)

    out = jax.block_until_ready(forward(x, weight, bias))
    ref = (x @ weight.T + bias)[..., None]
    assert out.shape == (batch, output_dim, 1), out.shape
    assert jnp.allclose(out, ref, atol=1e-4, rtol=1e-4), float(
        jnp.max(jnp.abs(out - ref))
    )

    # --- Test 2: medium shapes, multi-M-tile grid, single N/K tile ------------
    batch, input_dim, output_dim = 1024, 1024, 640
    k1, k2, key = jax.random.split(key, 3)
    x = jax.random.normal(k1, (batch, input_dim), dtype=jnp.float32)
    weight, bias = _init_linear_params(k2, input_dim, output_dim)

    out = jax.block_until_ready(forward(x, weight, bias))
    ref = (x @ weight.T + bias)[..., None]
    assert out.shape == (batch, output_dim, 1), out.shape
    assert jnp.allclose(out, ref, atol=2e-3, rtol=2e-3), float(
        jnp.max(jnp.abs(out - ref))
    )

    # --- Test 3: K-tiled accumulator path + partial (non-multiple-of-8) M edge -
    batch, input_dim, output_dim = 100, 4096, 384
    k1, k2, key = jax.random.split(key, 3)
    x = jax.random.normal(k1, (batch, input_dim), dtype=jnp.float32)
    weight, bias = _init_linear_params(k2, input_dim, output_dim)

    out = jax.block_until_ready(forward(x, weight, bias))
    ref = (x @ weight.T + bias)[..., None]
    assert out.shape == (batch, output_dim, 1), out.shape
    assert jnp.allclose(out, ref, atol=2e-3, rtol=2e-3), float(
        jnp.max(jnp.abs(out - ref))
    )

    print("KERNEL_OK")
</pallas_src>

<mosaic_0001>
module attributes {stable_mosaic.version = 11 : i64} {
  func.func @_dense_kernel_onepass(%arg0: i32, %arg1: i32, %arg2: memref<8x32xf32, #tpu.memory_space<vmem>>, %arg3: memref<16x32xf32, #tpu.memory_space<vmem>>, %arg4: memref<1x16xf32, #tpu.memory_space<vmem>>, %arg5: memref<8x16xf32, #tpu.memory_space<vmem>>) attributes {dimension_semantics = [#tpu.dimension_semantics<parallel>, #tpu.dimension_semantics<parallel>], iteration_bounds = array<i64: 1, 1>, scalar_prefetch = 0 : i64, scratch_operands = 0 : i64, tpu.core_type = #tpu.core_type<tc>, window_params = [{transform_indices = @transform_0, window_bounds = array<i64: 8, 32>}, {transform_indices = @transform_1, window_bounds = array<i64: 16, 32>}, {transform_indices = @transform_2, window_bounds = array<i64: 1, 16>}, {transform_indices = @transform_3, window_bounds = array<i64: 8, 16>}]} {
    %c0 = arith.constant 0 : index
    %c0_0 = arith.constant 0 : index
    %0 = vector.load %arg2[%c0, %c0_0] : memref<8x32xf32, #tpu.memory_space<vmem>>, vector<8x32xf32>
    %c0_1 = arith.constant 0 : index
    %c0_2 = arith.constant 0 : index
    %1 = vector.load %arg3[%c0_1, %c0_2] : memref<16x32xf32, #tpu.memory_space<vmem>>, vector<16x32xf32>
    %cst = arith.constant dense<0.000000e+00> : vector<8x16xf32>
    %2 = tpu.matmul %0, %1, %cst {dimension_numbers = #tpu.dot_dimension_numbers<[1], [1], [0], [0], [0, 0, 1, 0], [], []>} : vector<8x32xf32>, vector<16x32xf32>, vector<8x16xf32> -> vector<8x16xf32>
    %c0_3 = arith.constant 0 : index
    %c0_4 = arith.constant 0 : index
    %3 = vector.load %arg4[%c0_3, %c0_4] : memref<1x16xf32, #tpu.memory_space<vmem>>, vector<1x16xf32>
    %4 = vector.broadcast %3 : vector<1x16xf32> to vector<8x16xf32>
    %5 = arith.addf %2, %4 : vector<8x16xf32>
    %c0_5 = arith.constant 0 : index
    %c0_6 = arith.constant 0 : index
    %6 = vector.load %arg5[%c0_5, %c0_6] : memref<8x16xf32, #tpu.memory_space<vmem>>, vector<8x16xf32>
    tpu.vector_store %arg5[%c0_5, %c0_6], %5 {strides = array<i32>} : memref<8x16xf32, #tpu.memory_space<vmem>>, vector<8x16xf32>,
    return
  }
  func.func @transform_0(%arg0: i32, %arg1: i32) -> (i32, i32) {
    %c0_i32 = arith.constant 0 : i32
    %c0_i32_0 = arith.constant 0 : i32
    return %arg0, %c0_i32 : i32, i32
  }
  func.func @transform_1(%arg0: i32, %arg1: i32) -> (i32, i32) {
    %c0_i32 = arith.constant 0 : i32
    %c0_i32_0 = arith.constant 0 : i32
    return %arg1, %c0_i32 : i32, i32
  }
  func.func @transform_2(%arg0: i32, %arg1: i32) -> (i32, i32) {
    %c0_i32 = arith.constant 0 : i32
    %c0_i32_0 = arith.constant 0 : i32
    return %c0_i32, %arg1 : i32, i32
  }
  func.func @transform_3(%arg0: i32, %arg1: i32) -> (i32, i32) {
    %c0_i32 = arith.constant 0 : i32
    return %arg0, %arg1 : i32, i32
  }
}

</mosaic_0001>

<bundles_post_ra>
// kernel: dense_forward.1
= control target key start
LH: loop header
LB: loop body
LE: loop exit
PB: predicated region body
PF: predicated region fallthrough
CT: control target
= control target key end

     0   :  { %8 = vsyncpa [#allocation3], 0  ;;  %s321_s0 = inlined_call_operand.hbm [shape: f32[8,32], index: 0, kind: input, shape index: {}]   ;;  %s322_s1 = inlined_call_operand.hbm [shape: f32[16,32], index: 1, kind: input, shape index: {}]   ;;  %s323_s2 = inlined_call_operand.vmem [shape: f32[1,16], index: 2, kind: input, shape index: {}]   ;;  %s324_s3 = inlined_call_operand.hbm [shape: f32[8,16], index: 3, kind: output, shape index: {}]  }
   0x1   :  { %9 = vsyncpa [#allocation6], 0 }
   0x2   :  { %10 = vsyncpa [#allocation4], 0  ;;  %s247_s12 = smov [#allocation2]   ;;  %s248_s14 = smov [#allocation5]  }
   0x3   :  { %s17_s13 = sshll.u32 %s247_s12, 4  ;;  %s26_s15 = sshll.u32 %s248_s14, 4  ;;  %s18_s13 = int_to_ptr.vmem [resolvable:$true] %s17_s13  ;;  %s275_s15 = int_to_ptr.vmem [resolvable:$true] %s26_s15 }
   0x4   :  { %s175_s18 = scalar_lea.hbm %s321_s0, 128 }
   0x5   :  { %p176_p0 = scmp.ne.s32.totalorder %s321_s0, %s175_s18  ;;  %p179_p1 = scmp.lt.u32.totalorder %s175_s18, %s321_s0 }
   0x7   :  { %p181_p2 = pnand %p179_p1, %p176_p0 }
   0x9   :  { %184 = shalt.err (!%p181_p2)
}
   0xa   :  { %s185_s23 = scalar_lea.vmem %s18_s13, 128  ;;  %p190_p4 = scmp.lt.s32.totalorder %s18_s13, %s18_s13 }
   0xb   :  { %p186_p3 = scmp.ne.s32.totalorder %s18_s13, %s185_s23  ;;  %p191_p5 = scmp.lt.s32.totalorder %s185_s23, %s185_s23 }
   0xd   :  { %p192_p6 = por %p191_p5, %p190_p4 }
   0xf   :  { %p193_p7 = pnand %p192_p6, %p186_p3 }
  0x11   :  { %196 = shalt.err (!%p193_p7)
}
  0x12   :  { %20 = dma.hbm_to_vmem [thread:$0]  %s321_s0, 128, %s18_s13, [#allocation3]  }
  0x13   :  { %s197_s28 = scalar_lea.hbm %s322_s1, 256 }
  0x14   :  { %p198_p8 = scmp.ne.s32.totalorder %s322_s1, %s197_s28  ;;  %p201_p9 = scmp.lt.u32.totalorder %s197_s28, %s322_s1 }
  0x16   :  { %p203_p10 = pnand %p201_p9, %p198_p8 }
  0x18   :  { %206 = shalt.err (!%p203_p10)
}
  0x19   :  { %s207_s6 = scalar_lea.vmem %s275_s15, 256  ;;  %p212_p12 = scmp.lt.s32.totalorder %s275_s15, %s275_s15 }
  0x1a   :  { %p208_p11 = scmp.ne.s32.totalorder %s275_s15, %s207_s6  ;;  %p213_p13 = scmp.lt.s32.totalorder %s207_s6, %s207_s6 }
  0x1c   :  { %p214_p0 = por %p213_p13, %p212_p12 }
  0x1e   :  { %p215_p1 = pnand %p214_p0, %p208_p11 }
  0x20   :  { %218 = shalt.err (!%p215_p1)
}
  0x21   :  { %s249_s0 = smov 128   ;;  %s250_s7 = smov 8  }
  0x22   :  { %32 = dma.hbm_to_vmem [thread:$0]  %s322_s1, 256, %s275_s15, [#allocation6], %s249_s0, %s249_s0, %s250_s7  }
  0x23   :  { %241 = dma.done.wait [#allocation3], 128  }
  0x24   :  { %242 = vsyncadd [#allocation3], 4294967168 }
  0x25   :  { %243 = dma.done.wait [#allocation6], 256  }
  0x26   :  { %244 = vsyncadd [#allocation6], 4294967040  ;;  %v251_v0 = vmov 0.0|0.0   ;;  %vm252_vm0 = vmmov 0   ;;  %v253_v1 = vmov 0.0   ;;  %vm51_vm1 = vcmask 261120  }
  0x27   :  { %163 = vmatprep.subr.bf16.mxu0 %v251_v0  ;;  %160 = vmatprep.mubr.msk.f32.mxu0 %vm252_vm0, %v253_v1  ;;  %v42_v2 = vld [vmem:[#allocation5] sm:$0xff]  ;;  %v43_v3 = vld [vmem:[#allocation5 + $0x8] sm:$0xff]  ;;  %vm165_vm2 = vmpackc.low %vm51_vm1, %vm51_vm1  ;;  %s254_s1 = smov [#allocation7]   ;;  %vm131_vm3 = vcmask 130048  }
  0x28   :  { %v164_v4 = vpack.c.bf16 %v43_v3, %v42_v2  ;;  %v41_v5 = vld [vmem:[#allocation2] sm:$0xff]  ;;  %s139_s12 = sshll.u32 %s254_s1, 4  ;;  %s140_s12 = int_to_ptr.vmem [resolvable:$true] %s139_s12 }
  0x29   :  { %v149_v6 = vld [vmem:[%s323_s2] ss:$0 sm:$0xff]  ;;  %s219_s13 = scalar_lea.vmem %s140_s12, 128  ;;  %p224_p3 = scmp.lt.s32.totalorder %s140_s12, %s140_s12 }
  0x2a   :  { %166 = vmatpush3.bf16.xpose.msk.msra.mxu0 %vm165_vm2, %v164_v4  ;;  %p220_p2 = scmp.ne.s32.totalorder %s140_s12, %s219_s13  ;;  %p225_p4 = scmp.lt.s32.totalorder %s219_s13, %s219_s13 }
  0x2c   :  { %p226_p5 = por %p225_p4, %p224_p3 }
  0x2e   :  { %p227_p6 = pnand %p226_p5, %p220_p2 }
  0x31   :  { %161 = vmatmul.mubr.msk.f32.vlgmr.msra.gmra.mrb[0].mxu0 %vm51_vm1, %v41_v5 }
 0x104   :  { %v127_v7 = vpop.f32.mrb[0].mxu0 }
 0x105   :  { %v128_v8 = vadd.f32 %v149_v6, %v127_v7  ;;  %v162_v9 = vpop.f32.mrb[1].mxu0 }
 0x107   :  { %132 = vst.msk [vmem:[#allocation7] sm:$0xff] %vm131_vm3, %v128_v8 }
 0x108   :  { %230 = shalt.err (!%p227_p6)
}
 0x109   :  { %s231_s16 = scalar_lea.hbm %s324_s3, 128 }
 0x10a   :  { %p232_p7 = scmp.ne.s32.totalorder %s324_s3, %s231_s16  ;;  %p235_p8 = scmp.lt.u32.totalorder %s231_s16, %s324_s3 }
 0x10c   :  { %p237_p9 = pnand %p235_p8, %p232_p7 }
 0x10e   :  { %240 = shalt.err (!%p237_p9)
}
 0x10f   :  { %142 = dma.vmem_to_hbm [thread:$0]  %s140_s12, 128, %s324_s3, [#allocation4]  }
 0x110   :  { %245 = dma.done.wait [#allocation4], 128  }
 0x111   :  { %246 = vsyncadd [#allocation4], 4294967168 }
 0x112   :  { %146 = vsyncpa [#allocation3], 1 }
 0x113   :  { %147 = vsyncpa [#allocation6], 1 }
 0x114   :  { %148 = vsyncpa [#allocation4], 1 }

</bundles_post_ra>
